<compile_context>
chip_gen: v7x
topology: tpu7x:2x2x1
jax: 0.10.0
libtpu: 0.0.40
codegen_flags: <defaults>
</compile_context>

<pallas_src>
import jax
import jax.numpy as jnp
from jax.experimental import pallas as pl
from jax.experimental.pallas import tpu as pltpu

EPS = 1e-5
LANES = 128
SUBLANES = 8


def _round_up(n, m):
    return ((n + m - 1) // m) * m


def _bn_norm(x):
    """Training-mode BatchNorm1d normalization (no affine): batch mean, biased var.

    NOTE: at large batch tiles replace the axis-0 (cross-sublane, XLU) reduce with
    an MXU reduction (ones[1,TB] @ x and ones @ (x*x)); negligible at B=8.
    """
    mean = jnp.mean(x, axis=0, keepdims=True)
    centered = x - mean
    var = jnp.mean(centered * centered, axis=0, keepdims=True)
    return centered * jax.lax.rsqrt(var + EPS)


def head_kernel(x_ref, p_ref, out_ref):
    """Fused BN -> (Linear -> BN) -> (Linear -> BN), affines/biases pre-folded.

    x_ref  : [B, Wp]        TabNet output features, lane-padded (cols >= D zero)
    p_ref  : [2*Wp+8, Wp]   parameter slab:
                              rows [0, Wp)      : w1' = diag(g0)@w1, zero-padded
                              rows [Wp, 2*Wp)   : w2' = diag(g1)@w2, zero-padded
                              row  2*Wp + 0     : bb1' (= bb1 + b0@w1)
                              row  2*Wp + 1     : bb2' (= bb2 + be1@w2)
                              row  2*Wp + 2     : g2
                              row  2*Wp + 3     : be2
    out_ref: [B, Wp]        lane-dense logits slab (columns >= C are zero)
    """
    Wp = out_ref.shape[1]

    x = x_ref[...]
    w1 = p_ref[0:Wp, :]
    w2 = p_ref[Wp:2 * Wp, :]
    bb1 = p_ref[2 * Wp + 0:2 * Wp + 1, :]
    bb2 = p_ref[2 * Wp + 1:2 * Wp + 2, :]
    g2 = p_ref[2 * Wp + 2:2 * Wp + 3, :]
    be2 = p_ref[2 * Wp + 3:2 * Wp + 4, :]

    # Zero-padded columns stay exactly zero through every stage:
    # BN(0-col) = 0 * rsqrt(eps) = 0; zero weight rows/cols + zero bias keep pads 0.

    # top-level BatchNorm1d (affine folded into w1')
    xn = _bn_norm(x)

    # ClassificationBlock 0: Linear(D -> D) + BatchNorm1d(D)  (affine folded into w2')
    h1 = jnp.dot(xn, w1, preferred_element_type=jnp.float32) + bb1
    h1n = _bn_norm(h1)

    # ClassificationBlock 1 (last): Linear(D -> C) + BatchNorm1d(C), lane-padded.
    h2 = jnp.dot(h1n, w2, preferred_element_type=jnp.float32) + bb2
    out = _bn_norm(h2) * g2 + be2

    out_ref[...] = out.astype(out_ref.dtype)


def fold_and_pad_params(params, D, C):
    """One-time (per weight set) folding + lane padding into a single slab."""
    Wp = max(_round_up(D, LANES), _round_up(C, LANES))

    w1f = params["g0"].T * params["w1"]                     # [D, D] = diag(g0) @ w1
    bb1f = params["bb1"] + params["b0"] @ params["w1"]      # [1, D]
    w2f = params["g1"].T * params["w2"]                     # [D, C] = diag(g1) @ w2
    bb2f = params["bb2"] + params["be1"] @ params["w2"]     # [1, C]

    slab = (jnp.zeros((2 * Wp + SUBLANES, Wp), jnp.float32)
            .at[:D, :D].set(w1f)
            .at[Wp:Wp + D, :C].set(w2f)
            .at[2 * Wp + 0, :D].set(bb1f[0])
            .at[2 * Wp + 1, :C].set(bb2f[0])
            .at[2 * Wp + 2, :C].set(params["g2"][0])
            .at[2 * Wp + 3, :C].set(params["be2"][0]))
    return {"slab": slab, "Wp": Wp}


def tabnet_classifier_head(x, folded):
    """x: [B, D] f32 TabNet features.

    Returns the lane-dense logits slab [B, Wp]; valid logits live in columns [:C]
    (remaining columns are exactly zero).  Consumers should mask/slice in their
    own fused op rather than forcing an extra HBM copy here.
    """
    B, D = x.shape
    Wp = folded["Wp"]
    slab = folded["slab"]

    # TODO(synk): this pad disappears once the TabNet backbone kernel emits a
    # lane-dense [B, Wp] feature tile directly (or the head is fused into it).
    x_pad = jnp.zeros((B, Wp), jnp.float32).at[:, :D].set(x)

    cost = pl.CostEstimate(
        flops=2 * (2 * B * Wp * Wp) + 12 * B * Wp,   # 2 matmuls + BN/elementwise
        transcendentals=3 * Wp,                       # 3 rsqrt over Wp features
        bytes_accessed=4 * (x_pad.size + slab.size + B * Wp),
    )

    vmem = pl.BlockSpec(memory_space=pltpu.MemorySpace.VMEM)
    return pl.pallas_call(
        head_kernel,
        out_shape=jax.ShapeDtypeStruct((B, Wp), jnp.float32),
        in_specs=[vmem, vmem],
        out_specs=vmem,
        cost_estimate=cost,
    )(x_pad, slab)


def make_params(key, D, C):
    """Deterministic synthetic parameters (shapes match the PyTorch module).

    BN affines are non-trivial so the wrapper-side folding is actually exercised
    by the correctness check.
    """
    ks = jax.random.split(key, 10)
    # PyTorch Linear stores weight as [out, in]; pre-transposed here to [in, out].
    w1_pt = jax.random.normal(ks[0], (D, D), jnp.float32) * 0.1   # Linear(D, D).weight
    w2_pt = jax.random.normal(ks[1], (C, D), jnp.float32) * 0.1   # Linear(D, C).weight
    return {
        # top-level BatchNorm1d(tabnet_output_size)
        "g0": 1.0 + 0.1 * jax.random.normal(ks[2], (1, D), jnp.float32),
        "b0": 0.1 * jax.random.normal(ks[3], (1, D), jnp.float32),
        # ClassificationBlock 0
        "w1": w1_pt.T,
        "bb1": 0.01 * jax.random.normal(ks[4], (1, D), jnp.float32),
        "g1": 1.0 + 0.1 * jax.random.normal(ks[5], (1, D), jnp.float32),
        "be1": 0.1 * jax.random.normal(ks[6], (1, D), jnp.float32),
        # ClassificationBlock 1 (last -> n_output_classes)
        "w2": w2_pt.T,
        "bb2": 0.01 * jax.random.normal(ks[7], (1, C), jnp.float32),
        "g2": 1.0 + 0.1 * jax.random.normal(ks[8], (1, C), jnp.float32),
        "be2": 0.1 * jax.random.normal(ks[9], (1, C), jnp.float32),
    }


def reference_head(x, params):
    """Plain-JAX reference mirroring the PyTorch forward (training-mode BN, unfolded)."""
    def bn(v, g, b):
        m = jnp.mean(v, axis=0, keepdims=True)
        va = jnp.mean((v - m) ** 2, axis=0, keepdims=True)
        return (v - m) / jnp.sqrt(va + EPS) * g + b
    x = bn(x, params["g0"], params["b0"])
    x = x @ params["w1"] + params["bb1"]
    x = bn(x, params["g1"], params["be1"])
    x = x @ params["w2"] + params["bb2"]
    x = bn(x, params["g2"], params["be2"])
    return x


if __name__ == "__main__":
    # Small config consistent with the module's __init__ hyper-parameters:
    #   hidden_size=32, meaningful_part=0.5 -> tabnet_output_size D = 16
    #   n_output_classes C = 4, n_classification_layer = 2
    #   n_decision_steps = 3, n_features (embedded) = 20, batch B = 8
    B, D, C = 8, 16, 4
    n_decision_steps, n_features = 3, 20

    key = jax.random.PRNGKey(0)
    kx, km, kp = jax.random.split(key, 3)

    # Stand-in for TabNet backbone outputs (backbone code not provided).
    x = jax.random.normal(kx, (B, D), jnp.float32)
    masks = jax.random.uniform(km, (n_decision_steps, B, n_features), jnp.float32)

    params = make_params(kp, D, C)
    folded = fold_and_pad_params(params, D, C)   # one-time fold, amortized across calls

    out_slab = tabnet_classifier_head(x, folded)   # lane-dense [B, Wp]
    jax.block_until_ready(out_slab)

    # masks are returned unchanged, matching `return (x, masks)` in the module.
    out_masks = masks

    # Correctness check against a pure-JAX reference of the original (unfolded) math.
    # The consumer-side slice happens only here (kept off the kernel hot path).
    logits = out_slab[:, :C]
    ref = reference_head(x, params)
    assert out_slab.shape == (B, folded["Wp"])
    assert logits.shape == (B, C)
    assert out_masks.shape == (n_decision_steps, B, n_features)
    assert jnp.allclose(logits, ref, atol=5e-4, rtol=5e-4), "mismatch vs reference"
    assert jnp.all(out_slab[:, C:] == 0.0), "padded lanes must stay exactly zero"

    print("KERNEL_OK")
</pallas_src>

<mosaic_0001>
module attributes {stable_mosaic.version = 11 : i64} {
  func.func @head_kernel(%arg0: memref<8x128xf32, #tpu.memory_space<vmem>>, %arg1: memref<264x128xf32, #tpu.memory_space<vmem>>, %arg2: memref<8x128xf32, #tpu.memory_space<vmem>>) attributes {dimension_semantics = [], scalar_prefetch = 0 : i64, scratch_operands = 0 : i64, tpu.core_type = #tpu.core_type<tc>} {
    %c0 = arith.constant 0 : index
    %c0_0 = arith.constant 0 : index
    %0 = vector.load %arg0[%c0, %c0_0] : memref<8x128xf32, #tpu.memory_space<vmem>>, vector<8x128xf32>
    %c0_1 = arith.constant 0 : index
    %c0_2 = arith.constant 0 : index
    %1 = vector.load %arg1[%c0_1, %c0_2] : memref<264x128xf32, #tpu.memory_space<vmem>>, vector<128x128xf32>
    %c128 = arith.constant 128 : index
    %c0_3 = arith.constant 0 : index
    %2 = vector.load %arg1[%c128, %c0_3] : memref<264x128xf32, #tpu.memory_space<vmem>>, vector<128x128xf32>
    %c256 = arith.constant 256 : index
    %c0_4 = arith.constant 0 : index
    %3 = vector.load %arg1[%c256, %c0_4] : memref<264x128xf32, #tpu.memory_space<vmem>>, vector<1x128xf32>
    %c257 = arith.constant 257 : index
    %c0_5 = arith.constant 0 : index
    %4 = vector.load %arg1[%c257, %c0_5] : memref<264x128xf32, #tpu.memory_space<vmem>>, vector<1x128xf32>
    %c258 = arith.constant 258 : index
    %c0_6 = arith.constant 0 : index
    %5 = vector.load %arg1[%c258, %c0_6] : memref<264x128xf32, #tpu.memory_space<vmem>>, vector<1x128xf32>
    %c259 = arith.constant 259 : index
    %c0_7 = arith.constant 0 : index
    %6 = vector.load %arg1[%c259, %c0_7] : memref<264x128xf32, #tpu.memory_space<vmem>>, vector<1x128xf32>
    %cst = arith.constant dense<0.000000e+00> : vector<128xf32>
    %7 = vector.multi_reduction <add>, %0, %cst [0] : vector<8x128xf32> to vector<128xf32>
    %8 = vector.shape_cast %7 : vector<128xf32> to vector<1x128xf32>
    %cst_8 = arith.constant 8.000000e+00 : f32
    %9 = vector.broadcast %cst_8 : f32 to vector<1x128xf32>
    %10 = arith.divf %8, %9 : vector<1x128xf32>
    %11 = vector.broadcast %10 : vector<1x128xf32> to vector<8x128xf32>
    %12 = arith.subf %0, %11 : vector<8x128xf32>
    %13 = arith.mulf %12, %12 : vector<8x128xf32>
    %cst_9 = arith.constant dense<0.000000e+00> : vector<128xf32>
    %14 = vector.multi_reduction <add>, %13, %cst_9 [0] : vector<8x128xf32> to vector<128xf32>
    %15 = vector.shape_cast %14 : vector<128xf32> to vector<1x128xf32>
    %cst_10 = arith.constant 8.000000e+00 : f32
    %16 = vector.broadcast %cst_10 : f32 to vector<1x128xf32>
    %17 = arith.divf %15, %16 : vector<1x128xf32>
    %cst_11 = arith.constant 9.99999974E-6 : f32
    %18 = vector.broadcast %cst_11 : f32 to vector<1x128xf32>
    %19 = arith.addf %17, %18 : vector<1x128xf32>
    %20 = math.rsqrt %19 : vector<1x128xf32>
    %21 = vector.broadcast %20 : vector<1x128xf32> to vector<8x128xf32>
    %22 = arith.mulf %12, %21 : vector<8x128xf32>
    %cst_12 = arith.constant dense<0.000000e+00> : vector<8x128xf32>
    %23 = tpu.matmul %22, %1, %cst_12 {dimension_numbers = #tpu.dot_dimension_numbers<[1], [0], [0], [1], [0, 0, 1, 1], [], []>} : vector<8x128xf32>, vector<128x128xf32>, vector<8x128xf32> -> vector<8x128xf32>
    %24 = vector.broadcast %3 : vector<1x128xf32> to vector<8x128xf32>
    %25 = arith.addf %23, %24 : vector<8x128xf32>
    %cst_13 = arith.constant dense<0.000000e+00> : vector<128xf32>
    %26 = vector.multi_reduction <add>, %25, %cst_13 [0] : vector<8x128xf32> to vector<128xf32>
    %27 = vector.shape_cast %26 : vector<128xf32> to vector<1x128xf32>
    %cst_14 = arith.constant 8.000000e+00 : f32
    %28 = vector.broadcast %cst_14 : f32 to vector<1x128xf32>
    %29 = arith.divf %27, %28 : vector<1x128xf32>
    %30 = vector.broadcast %29 : vector<1x128xf32> to vector<8x128xf32>
    %31 = arith.subf %25, %30 : vector<8x128xf32>
    %32 = arith.mulf %31, %31 : vector<8x128xf32>
    %cst_15 = arith.constant dense<0.000000e+00> : vector<128xf32>
    %33 = vector.multi_reduction <add>, %32, %cst_15 [0] : vector<8x128xf32> to vector<128xf32>
    %34 = vector.shape_cast %33 : vector<128xf32> to vector<1x128xf32>
    %cst_16 = arith.constant 8.000000e+00 : f32
    %35 = vector.broadcast %cst_16 : f32 to vector<1x128xf32>
    %36 = arith.divf %34, %35 : vector<1x128xf32>
    %cst_17 = arith.constant 9.99999974E-6 : f32
    %37 = vector.broadcast %cst_17 : f32 to vector<1x128xf32>
    %38 = arith.addf %36, %37 : vector<1x128xf32>
    %39 = math.rsqrt %38 : vector<1x128xf32>
    %40 = vector.broadcast %39 : vector<1x128xf32> to vector<8x128xf32>
    %41 = arith.mulf %31, %40 : vector<8x128xf32>
    %cst_18 = arith.constant dense<0.000000e+00> : vector<8x128xf32>
    %42 = tpu.matmul %41, %2, %cst_18 {dimension_numbers = #tpu.dot_dimension_numbers<[1], [0], [0], [1], [0, 0, 1, 1], [], []>} : vector<8x128xf32>, vector<128x128xf32>, vector<8x128xf32> -> vector<8x128xf32>
    %43 = vector.broadcast %4 : vector<1x128xf32> to vector<8x128xf32>
    %44 = arith.addf %42, %43 : vector<8x128xf32>
    %cst_19 = arith.constant dense<0.000000e+00> : vector<128xf32>
    %45 = vector.multi_reduction <add>, %44, %cst_19 [0] : vector<8x128xf32> to vector<128xf32>
    %46 = vector.shape_cast %45 : vector<128xf32> to vector<1x128xf32>
    %cst_20 = arith.constant 8.000000e+00 : f32
    %47 = vector.broadcast %cst_20 : f32 to vector<1x128xf32>
    %48 = arith.divf %46, %47 : vector<1x128xf32>
    %49 = vector.broadcast %48 : vector<1x128xf32> to vector<8x128xf32>
    %50 = arith.subf %44, %49 : vector<8x128xf32>
    %51 = arith.mulf %50, %50 : vector<8x128xf32>
    %cst_21 = arith.constant dense<0.000000e+00> : vector<128xf32>
    %52 = vector.multi_reduction <add>, %51, %cst_21 [0] : vector<8x128xf32> to vector<128xf32>
    %53 = vector.shape_cast %52 : vector<128xf32> to vector<1x128xf32>
    %cst_22 = arith.constant 8.000000e+00 : f32
    %54 = vector.broadcast %cst_22 : f32 to vector<1x128xf32>
    %55 = arith.divf %53, %54 : vector<1x128xf32>
    %cst_23 = arith.constant 9.99999974E-6 : f32
    %56 = vector.broadcast %cst_23 : f32 to vector<1x128xf32>
    %57 = arith.addf %55, %56 : vector<1x128xf32>
    %58 = math.rsqrt %57 : vector<1x128xf32>
    %59 = vector.broadcast %58 : vector<1x128xf32> to vector<8x128xf32>
    %60 = arith.mulf %50, %59 : vector<8x128xf32>
    %61 = vector.broadcast %5 : vector<1x128xf32> to vector<8x128xf32>
    %62 = arith.mulf %60, %61 : vector<8x128xf32>
    %63 = vector.broadcast %6 : vector<1x128xf32> to vector<8x128xf32>
    %64 = arith.addf %62, %63 : vector<8x128xf32>
    %c0_24 = arith.constant 0 : index
    %c0_25 = arith.constant 0 : index
    %65 = vector.load %arg2[%c0_24, %c0_25] : memref<8x128xf32, #tpu.memory_space<vmem>>, vector<8x128xf32>
    tpu.vector_store %arg2[%c0_24, %c0_25], %64 {strides = array<i32>} : memref<8x128xf32, #tpu.memory_space<vmem>>, vector<8x128xf32>,
    return
  }
}

</mosaic_0001>

<bundles_post_ra>
// kernel: tpu_custom_call.1
= control target key start
LH: loop header
LB: loop body
LE: loop exit
PB: predicated region body
PF: predicated region fallthrough
CT: control target
= control target key end

     0   :  { %7 = vsyncpa [#allocation3], 0  ;;  %s632_s0 = inlined_call_operand.hbm [shape: f32[8,128], index: 0, kind: input, shape index: {}]   ;;  %s633_s1 = inlined_call_operand.hbm [shape: f32[264,128], index: 1, kind: input, shape index: {}]   ;;  %s634_s2 = inlined_call_operand.hbm [shape: f32[8,128], index: 2, kind: output, shape index: {}]  }
   0x1   :  { %8 = vsyncpa [#allocation6], 0 }
   0x2   :  { %9 = vsyncpa [#allocation4], 0  ;;  %s550_s9 = smov [#allocation2]   ;;  %s551_s11 = smov [#allocation5]  }
   0x3   :  { %s16_s10 = sshll.u32 %s550_s9, 4  ;;  %s25_s12 = sshll.u32 %s551_s11, 4  ;;  %s17_s10 = int_to_ptr.vmem [resolvable:$true] %s16_s10  ;;  %s573_s12 = int_to_ptr.vmem [resolvable:$true] %s25_s12 }
   0x4   :  { %s478_s15 = scalar_lea.hbm %s632_s0, 128 }
   0x5   :  { %p479_p0 = scmp.ne.s32.totalorder %s632_s0, %s478_s15  ;;  %p482_p1 = scmp.lt.u32.totalorder %s478_s15, %s632_s0 }
   0x7   :  { %p484_p2 = pnand %p482_p1, %p479_p0 }
   0x9   :  { %487 = shalt.err (!%p484_p2)
}
   0xa   :  { %s488_s20 = scalar_lea.vmem %s17_s10, 128  ;;  %p493_p4 = scmp.lt.s32.totalorder %s17_s10, %s17_s10 }
   0xb   :  { %p489_p3 = scmp.ne.s32.totalorder %s17_s10, %s488_s20  ;;  %p494_p5 = scmp.lt.s32.totalorder %s488_s20, %s488_s20 }
   0xd   :  { %p495_p6 = por %p494_p5, %p493_p4 }
   0xf   :  { %p496_p7 = pnand %p495_p6, %p489_p3 }
  0x11   :  { %499 = shalt.err (!%p496_p7)
}
  0x12   :  { %19 = dma.hbm_to_vmem [thread:$0]  %s632_s0, 128, %s17_s10, [#allocation3]  }
  0x13   :  { %s500_s25 = scalar_lea.hbm %s633_s1, 4224 }
  0x14   :  { %p501_p8 = scmp.ne.s32.totalorder %s633_s1, %s500_s25  ;;  %p504_p9 = scmp.lt.u32.totalorder %s500_s25, %s633_s1 }
  0x16   :  { %p506_p10 = pnand %p504_p9, %p501_p8 }
  0x18   :  { %509 = shalt.err (!%p506_p10)
}
  0x19   :  { %s510_s30 = scalar_lea.vmem %s573_s12, 4224  ;;  %p515_p12 = scmp.lt.s32.totalorder %s573_s12, %s573_s12 }
  0x1a   :  { %p511_p11 = scmp.ne.s32.totalorder %s573_s12, %s510_s30  ;;  %p516_p13 = scmp.lt.s32.totalorder %s510_s30, %s510_s30 }
  0x1c   :  { %p517_p0 = por %p516_p13, %p515_p12 }
  0x1e   :  { %p518_p1 = pnand %p517_p0, %p511_p11 }
  0x20   :  { %521 = shalt.err (!%p518_p1)
}
  0x21   :  { %s552_s0 = smov 128   ;;  %s553_s3 = smov 8  }
  0x22   :  { %31 = dma.hbm_to_vmem [thread:$0]  %s633_s1, 4224, %s573_s12, [#allocation6], %s552_s0, %s552_s0, %s553_s3  }
  0x23   :  { %544 = dma.done.wait [#allocation3], 128  }
  0x24   :  { %545 = vsyncadd [#allocation3], 4294967168 }
  0x25   :  { %546 = dma.done.wait [#allocation6], 4224  }
  0x26   :  { %547 = vsyncadd [#allocation6], 4294963072  ;;  %v554_v0 = vmov 0.0|0.0   ;;  %vm555_vm0 = vmmov 0   ;;  %v556_v1 = vmov 0.0   ;;  %v39_v2 = vld [vmem:[#allocation5] sm:$0xff] }
  0x27   :  { %416 = vmatprep.subr.bf16.mxu0 %v554_v0  ;;  %378 = vmatprep.mubr.msk.f32.mxu0 %vm555_vm0, %v556_v1  ;;  %v40_v3 = vld [vmem:[#allocation5 + $0x8] sm:$0xff]  ;;  %v41_v4 = vld [vmem:[#allocation5 + $0x10] sm:$0xff]  ;;  %v42_v6 = vld [vmem:[#allocation5 + $0x18] sm:$0xff]  ;;  %s557_s1 = smov [#allocation7]  }
  0x28   :  { %440 = vmatprep.subr.bf16.mxu1 %v554_v0  ;;  %413 = vmatprep.mubr.msk.f32.mxu1 %vm555_vm0, %v556_v1  ;;  %v417_v5 = vpack.c.bf16 %v40_v3, %v39_v2  ;;  %v420_v7 = vpack.c.bf16 %v42_v6, %v41_v4  ;;  %v43_v8 = vld [vmem:[#allocation5 + $0x20] sm:$0xff]  ;;  %v44_v9 = vld [vmem:[#allocation5 + $0x28] sm:$0xff]  ;;  %v38_v10 = vld [vmem:[#allocation2] sm:$0xff]  ;;  %s298_s6 = sshll.u32 %s557_s1, 4  ;;  %s299_s6 = int_to_ptr.vmem [resolvable:$true] %s298_s6 }
  0x29   :  { %v75_v11 = vrot.slane %v38_v10, 4  ;;  %v423_v12 = vpack.c.bf16 %v44_v9, %v43_v8  ;;  %v45_v13 = vld [vmem:[#allocation5 + $0x30] sm:$0xff]  ;;  %v46_v14 = vld [vmem:[#allocation5 + $0x38] sm:$0xff]  ;;  %v47_v18 = vld [vmem:[#allocation5 + $0x40] sm:$0xff]  ;;  %s522_s7 = scalar_lea.vmem %s299_s6, 128  ;;  %p527_p3 = scmp.lt.s32.totalorder %s299_s6, %s299_s6 }
  0x2a   :  { %418 = vmatpush3.bf16.msra.mxu0 %v417_v5  ;;  %v426_v17 = vpack.c.bf16 %v46_v14, %v45_v13  ;;  %v48_v19 = vld [vmem:[#allocation5 + $0x48] sm:$0xff]  ;;  %v49_v23 = vld [vmem:[#allocation5 + $0x50] sm:$0xff]  ;;  %v50_v24 = vld [vmem:[#allocation5 + $0x58] sm:$0xff]  ;;  %p523_p2 = scmp.ne.s32.totalorder %s299_s6, %s522_s7  ;;  %p528_p4 = scmp.lt.s32.totalorder %s522_s7, %s522_s7 }
  0x2b   :  { %419 = vmatprep.subr.bf16.mxu0 %v554_v0  ;;  %v76_v15 = vadd.f32 %v75_v11, %v38_v10  ;;  %v429_v22 = vpack.c.bf16 %v48_v19, %v47_v18  ;;  %v432_v27 = vpack.c.bf16 %v50_v24, %v49_v23  ;;  %v51_v28 = vld [vmem:[#allocation5 + $0x60] sm:$0xff]  ;;  %v52_v29 = vld [vmem:[#allocation5 + $0x68] sm:$0xff]  ;;  %v53_v33 = vld [vmem:[#allocation5 + $0x70] sm:$0xff] }
  0x2c   :  { %v435_v32 = vpack.c.bf16 %v52_v29, %v51_v28  ;;  %v54_v34 = vld [vmem:[#allocation5 + $0x78] sm:$0xff]  ;;  %v55_v46 = vld [vmem:[#allocation5 + $0x80] sm:$0xff]  ;;  %v56_v47 = vld [vmem:[#allocation5 + $0x88] sm:$0xff]  ;;  %p529_p5 = por %p528_p4, %p527_p3 }
  0x2d   :  { %v77_v16 = vrot.slane %v76_v15, 2  ;;  %v438_v37 = vpack.c.bf16 %v54_v34, %v53_v33  ;;  %v441_v48 = vpack.c.bf16 %v56_v47, %v55_v46  ;;  %v57_v49 = vld [vmem:[#allocation5 + $0x90] sm:$0xff]  ;;  %v58_v50 = vld [vmem:[#allocation5 + $0x98] sm:$0xff]  ;;  %v59_v52 = vld [vmem:[#allocation5 + $0xa0] sm:$0xff] }
  0x2e   :  { %421 = vmatpush3.bf16.msra.mxu0 %v420_v7  ;;  %v444_v51 = vpack.c.bf16 %v58_v50, %v57_v49  ;;  %v60_v53 = vld [vmem:[#allocation5 + $0xa8] sm:$0xff]  ;;  %v61_v55 = vld [vmem:[#allocation5 + $0xb0] sm:$0xff]  ;;  %v62_v56 = vld [vmem:[#allocation5 + $0xb8] sm:$0xff]  ;;  %p530_p6 = pnand %p529_p5, %p523_p2 }
  0x2f   :  { %422 = vmatprep.subr.bf16.mxu0 %v554_v0  ;;  %v78_v20 = vadd.f32 %v77_v16, %v76_v15  ;;  %442 = vmatpush3.bf16.msra.mxu1 %v441_v48  ;;  %v447_v54 = vpack.c.bf16 %v60_v53, %v59_v52  ;;  %v450_v57 = vpack.c.bf16 %v62_v56, %v61_v55  ;;  %v63_v58 = vld [vmem:[#allocation5 + $0xc0] sm:$0xff]  ;;  %v64_v59 = vld [vmem:[#allocation5 + $0xc8] sm:$0xff]  ;;  %v65_v61 = vld [vmem:[#allocation5 + $0xd0] sm:$0xff] }
  0x30   :  { %443 = vmatprep.subr.bf16.mxu1 %v554_v0  ;;  %v453_v60 = vpack.c.bf16 %v64_v59, %v63_v58  ;;  %v66_v62 = vld [vmem:[#allocation5 + $0xd8] sm:$0xff]  ;;  %v67_v1 = vld [vmem:[#allocation5 + $0xe0] sm:$0xff]  ;;  %v68_v2 = vld [vmem:[#allocation5 + $0xe8] sm:$0xff] }
  0x31   :  { %v79_v21 = vrot.slane %v78_v20, 1  ;;  %v456_v63 = vpack.c.bf16 %v66_v62, %v65_v61  ;;  %v459_v3 = vpack.c.bf16 %v68_v2, %v67_v1  ;;  %v69_v4 = vld [vmem:[#allocation5 + $0xf0] sm:$0xff]  ;;  %v70_v5 = vld [vmem:[#allocation5 + $0xf8] sm:$0xff]  ;;  %v308_v7 = vld [vmem:[#allocation5 + $0x100] ss:$0 sm:$0xff] }
  0x32   :  { %424 = vmatpush3.bf16.msra.mxu0 %v423_v12  ;;  %v462_v6 = vpack.c.bf16 %v70_v5, %v69_v4  ;;  %v309_v29 = vld [vmem:[#allocation5 + $0x101] ss:$0 sm:$0xff]  ;;  %v311_v53 = vld [vmem:[#allocation5 + $0x103] ss:$0 sm:$0xff] }
  0x33   :  { %425 = vmatprep.subr.bf16.mxu0 %v554_v0  ;;  %v80_v25 = vadd.f32 %v79_v21, %v78_v20  ;;  %445 = vmatpush3.bf16.msra.mxu1 %v444_v51  ;;  %v310_v51 = vld [vmem:[#allocation5 + $0x102] ss:$0 sm:$0xff] }
  0x34   :  { %446 = vmatprep.subr.bf16.mxu1 %v554_v0 }
  0x35   :  { %v82_v26 = vmul.f32 0.125, %v80_v25 }
  0x36   :  { %427 = vmatpush3.bf16.msra.mxu0 %v426_v17 }
  0x37   :  { %428 = vmatprep.subr.bf16.mxu0 %v554_v0  ;;  %v83_v30 = vsub.f32 %v38_v10, %v82_v26  ;;  %448 = vmatpush3.bf16.msra.mxu1 %v447_v54 }
  0x38   :  { %449 = vmatprep.subr.bf16.mxu1 %v554_v0 }
  0x39   :  { %v84_v31 = vmul.f32 %v83_v30, %v83_v30 }
  0x3a   :  { %430 = vmatpush3.bf16.msra.mxu0 %v429_v22 }
  0x3b   :  { %431 = vmatprep.subr.bf16.mxu0 %v554_v0  ;;  %v85_v35 = vrot.slane %v84_v31, 4  ;;  %451 = vmatpush3.bf16.msra.mxu1 %v450_v57 }
  0x3c   :  { %452 = vmatprep.subr.bf16.mxu1 %v554_v0 }
  0x3d   :  { %v86_v36 = vadd.f32 %v85_v35, %v84_v31 }
  0x3e   :  { %433 = vmatpush3.bf16.msra.mxu0 %v432_v27 }
  0x3f   :  { %434 = vmatprep.subr.bf16.mxu0 %v554_v0  ;;  %v87_v38 = vrot.slane %v86_v36, 2  ;;  %454 = vmatpush3.bf16.msra.mxu1 %v453_v60 }
  0x40   :  { %455 = vmatprep.subr.bf16.mxu1 %v554_v0 }
  0x41   :  { %v88_v39 = vadd.f32 %v87_v38, %v86_v36 }
  0x42   :  { %436 = vmatpush3.bf16.msra.mxu0 %v435_v32 }
  0x43   :  { %437 = vmatprep.subr.bf16.mxu0 %v554_v0  ;;  %v89_v40 = vrot.slane %v88_v39, 1  ;;  %457 = vmatpush3.bf16.msra.mxu1 %v456_v63 }
  0x44   :  { %458 = vmatprep.subr.bf16.mxu1 %v554_v0 }
  0x45   :  { %v90_v41 = vadd.f32 %v89_v40, %v88_v39 }
  0x46   :  { %439 = vmatpush3.bf16.msra.mxu0 %v438_v37 }
  0x47   :  { %v91_v42 = vmul.f32 0.125, %v90_v41  ;;  %460 = vmatpush3.bf16.msra.mxu1 %v459_v3 }
  0x48   :  { %461 = vmatprep.subr.bf16.mxu1 %v554_v0 }
  0x49   :  { %v92_v43 = vadd.f32 1e-05, %v91_v42 }
  0x4b   :  { %472 = vrsqrt.f32 %v92_v43  ;;  %463 = vmatpush3.bf16.msra.mxu1 %v462_v6 }
  0x55   :  { %v473_v44 = vpop.eup %472 }
  0x56   :  { %v94_v45 = vmul.f32 %v473_v44, %v83_v30 }
  0x58   :  { %379 = vmatmul.mubr.f32.vlgmr.msra.gmra.mrb[0].mxu0 %v94_v45 }
 0x12b   :  { %v165_v8 = vpop.f32.mrb[0].mxu0 }
 0x12c   :  { %v166_v9 = vadd.f32 %v308_v7, %v165_v8  ;;  %v380_v10 = vpop.f32.mrb[1].mxu0 }
 0x12e   :  { %v169_v11 = vrot.slane %v166_v9, 4 }
 0x130   :  { %v170_v12 = vadd.f32 %v169_v11, %v166_v9 }
 0x132   :  { %v171_v13 = vrot.slane %v170_v12, 2 }
 0x134   :  { %v172_v14 = vadd.f32 %v171_v13, %v170_v12 }
 0x136   :  { %v173_v15 = vrot.slane %v172_v14, 1 }
 0x138   :  { %v174_v16 = vadd.f32 %v173_v15, %v172_v14 }
 0x13a   :  { %v175_v17 = vmul.f32 0.125, %v174_v16 }
 0x13c   :  { %v176_v18 = vsub.f32 %v166_v9, %v175_v17 }
 0x13e   :  { %v177_v19 = vmul.f32 %v176_v18, %v176_v18 }
 0x140   :  { %v178_v20 = vrot.slane %v177_v19, 4 }
 0x142   :  { %v179_v21 = vadd.f32 %v178_v20, %v177_v19 }
 0x144   :  { %v180_v22 = vrot.slane %v179_v21, 2 }
 0x146   :  { %v181_v23 = vadd.f32 %v180_v22, %v179_v21 }
 0x148   :  { %v182_v24 = vrot.slane %v181_v23, 1 }
 0x14a   :  { %v183_v0 = vadd.f32 %v182_v24, %v181_v23 }
 0x14c   :  { %v184_v25 = vmul.f32 0.125, %v183_v0 }
 0x14e   :  { %v185_v26 = vadd.f32 1e-05, %v184_v25 }
 0x150   :  { %474 = vrsqrt.f32 %v185_v26 }
 0x15a   :  { %v475_v27 = vpop.eup %474 }
 0x15b   :  { %v187_v28 = vmul.f32 %v475_v27, %v176_v18 }
 0x15d   :  { %414 = vmatmul.mubr.f32.vlgmr.msra.gmra.mrb[0].mxu1 %v187_v28 }
 0x230   :  { %v258_v30 = vpop.f32.mrb[0].mxu1 }
 0x231   :  { %v259_v31 = vadd.f32 %v309_v29, %v258_v30  ;;  %v415_v32 = vpop.f32.mrb[1].mxu1 }
 0x233   :  { %v262_v33 = vrot.slane %v259_v31, 4 }
 0x235   :  { %v263_v34 = vadd.f32 %v262_v33, %v259_v31 }
 0x237   :  { %v264_v35 = vrot.slane %v263_v34, 2 }
 0x239   :  { %v265_v36 = vadd.f32 %v264_v35, %v263_v34 }
 0x23b   :  { %v266_v37 = vrot.slane %v265_v36, 1 }
 0x23d   :  { %v267_v38 = vadd.f32 %v266_v37, %v265_v36 }
 0x23f   :  { %v268_v39 = vmul.f32 0.125, %v267_v38 }
 0x241   :  { %v269_v40 = vsub.f32 %v259_v31, %v268_v39 }
 0x243   :  { %v270_v41 = vmul.f32 %v269_v40, %v269_v40 }
 0x245   :  { %v271_v42 = vrot.slane %v270_v41, 4 }
 0x247   :  { %v272_v43 = vadd.f32 %v271_v42, %v270_v41 }
 0x249   :  { %v273_v44 = vrot.slane %v272_v43, 2 }
 0x24b   :  { %v274_v45 = vadd.f32 %v273_v44, %v272_v43 }
 0x24d   :  { %v275_v46 = vrot.slane %v274_v45, 1 }
 0x24f   :  { %v276_v47 = vadd.f32 %v275_v46, %v274_v45 }
 0x251   :  { %v277_v48 = vmul.f32 0.125, %v276_v47 }
 0x253   :  { %v278_v49 = vadd.f32 1e-05, %v277_v48 }
 0x255   :  { %476 = vrsqrt.f32 %v278_v49 }
 0x25f   :  { %v477_v50 = vpop.eup %476 }
 0x260   :  { %v280_v52 = vmul.f32 %v477_v50, %v269_v40 }
 0x262   :  { %v285_v54 = vmul.f32 %v310_v51, %v280_v52 }
 0x264   :  { %v290_v55 = vadd.f32 %v311_v53, %v285_v54 }
 0x266   :  { %291 = vst [vmem:[#allocation7] sm:$0xff] %v290_v55 }
 0x267   :  { %533 = shalt.err (!%p530_p6)
}
 0x268   :  { %s534_s10 = scalar_lea.hbm %s634_s2, 128 }
 0x269   :  { %p535_p7 = scmp.ne.s32.totalorder %s634_s2, %s534_s10  ;;  %p538_p8 = scmp.lt.u32.totalorder %s534_s10, %s634_s2 }
 0x26b   :  { %p540_p9 = pnand %p538_p8, %p535_p7 }
 0x26d   :  { %543 = shalt.err (!%p540_p9)
}
 0x26e   :  { %301 = dma.vmem_to_hbm [thread:$0]  %s299_s6, 128, %s634_s2, [#allocation4]  }
 0x26f   :  { %548 = dma.done.wait [#allocation4], 128  }
 0x270   :  { %549 = vsyncadd [#allocation4], 4294967168 }
 0x271   :  { %305 = vsyncpa [#allocation3], 1 }
 0x272   :  { %306 = vsyncpa [#allocation6], 1 }
 0x273   :  { %307 = vsyncpa [#allocation4], 1 }

</bundles_post_ra>
